<compile_context>
chip_gen: v7x
topology: tpu7x:2x2x1
jax: 0.10.0
libtpu: 0.0.40
codegen_flags: <defaults>
</compile_context>

<pallas_src>
import jax
import jax.numpy as jnp
from jax import lax
from jax.experimental import pallas as pl
from jax.experimental.pallas import tpu as pltpu

KS = 7          # spatial-attention kernel size
PAD = KS // 2   # padding = 3  ("same" conv)


def _pick_nb(N, C, HW, itemsize):
    """Batch elements per grid step.

    Big enough to amortize the ~0.35us per-step overhead, small enough that the
    x / out1 working set stays in vregs, and (when N >= 2) leaving at least two
    grid steps so the 'parallel' batch axis can shard across v7x's two
    TensorCores.
    """
    budget = 64 * 1024                                    # ~16 f32 vregs per array
    nb = max(1, budget // max(1, C * HW * itemsize))
    if N >= 2:
        nb = min(nb, max(1, N // 2))
    nb = min(nb, N)
    while N % nb:
        nb -= 1
    return nb


def make_cbam_kernel(NB, C, H, W):
    HW = H * W
    inv_hw = 1.0 / float(HW)
    inv_c = 1.0 / float(C)

    def kernel(x_ref, w1_ref, w2_ref, ids_ref, wmat_ref, o_ref):
        w1 = w1_ref[...]                                   # (hidden, C)
        w2 = w2_ref[...]                                   # (C, hidden)
        wmat = wmat_ref[...]                               # (KS, 2*KS)

        # ---------------- Channel attention ----------------
        xs = [x_ref[n].astype(jnp.float32) for n in range(NB)]        # (C, HW)
        ones_col = jnp.ones((HW, 1), jnp.float32)
        # avg pool as MXU matmul vs ones (overlaps the XLU max reduction);
        # both pools land in (C, 1) column layout, ready for the MLP matmuls.
        avg_cols = [jnp.dot(xs[n], ones_col,
                            preferred_element_type=jnp.float32) * inv_hw
                    for n in range(NB)]
        max_cols = [jnp.max(xs[n], axis=1, keepdims=True) for n in range(NB)]
        pooled = jnp.concatenate(avg_cols + max_cols, axis=1)         # (C, 2*NB)

        # Shared MLP fused over {avg, max} x batch: one matmul pair per step.
        h = jnp.maximum(
            jnp.dot(w1, pooled, preferred_element_type=jnp.float32), 0.0)
        y = jnp.dot(w2, h, preferred_element_type=jnp.float32)        # (C, 2*NB)
        ch_scale = jax.nn.sigmoid(y[:, :NB] + y[:, NB:])              # (C, NB)

        # Channel gating (lane-dense, (C,1) column broadcast over HW lanes).
        outs = [xs[n] * ch_scale[:, n:n + 1] for n in range(NB)]      # (C, HW)

        # ---------------- Spatial attention ----------------
        ids = ids_ref[...]                                            # (2, HW) i32
        hh = ids[0:1, :]                                              # row index
        ww = ids[1:2, :]                                              # col index

        # Hoisted zero-padding border masks for the "same" conv: one boolean
        # (1, HW) row per vertical / horizontal offset (12 compares total).
        h_ok = [None] * KS
        w_ok = [None] * KS
        for k in range(KS):
            d = k - PAD
            if d > 0:
                h_ok[k] = hh < (H - d)
                w_ok[k] = ww < (W - d)
            elif d < 0:
                h_ok[k] = hh >= (-d)
                w_ok[k] = ww >= (-d)

        ones_row = jnp.ones((1, C), jnp.float32)
        for n in range(NB):
            # Pool over channels: avg on the MXU, max on the XLU (overlap).
            a_sp = jnp.dot(ones_row, outs[n],
                           preferred_element_type=jnp.float32) * inv_c  # (1, HW)
            m_sp = jnp.max(outs[n], axis=0, keepdims=True)              # (1, HW)

            # Vertical pass: 7 row-shifted (+masked) copies of each pooled plane.
            # pltpu.roll follows jnp.roll semantics: result[i] = x[(i - s) % n],
            # so rolling by (-dh*W) % HW gives result[q] = plane[q + dh*W].
            rows = []
            for plane in (a_sp, m_sp):        # conv input channel order: [avg, max]
                for kh in range(KS):
                    dh = kh - PAD
                    v = plane if dh == 0 else pltpu.roll(
                        plane, (-dh * W) % HW, axis=1)
                    if h_ok[kh] is not None:
                        v = jnp.where(h_ok[kh], v, 0.0)
                    rows.append(v)
            vmat = jnp.concatenate(rows, axis=0)                        # (2*KS, HW)

            # All 98 conv taps in one MXU matmul:
            #   s_all[kw, :] = sum_{c,kh} wconv[0, c, kh, kw] * V[c, kh, :]
            s_all = jnp.dot(wmat, vmat,
                            preferred_element_type=jnp.float32)         # (KS, HW)

            # Horizontal pass: shift each per-kw partial, mask, accumulate.
            conv = s_all[PAD:PAD + 1, :]                # dw = 0: no shift, no mask
            for kw in range(KS):
                dw = kw - PAD
                if dw == 0:
                    continue
                s = pltpu.roll(s_all[kw:kw + 1, :], (-dw) % HW, axis=1)
                conv = conv + jnp.where(w_ok[kw], s, 0.0)

            sp_scale = jax.nn.sigmoid(conv)                              # (1, HW)

            # ---------------- Gating + lane-dense store ----------------
            o_ref[n] = (outs[n] * sp_scale).astype(o_ref.dtype)

    return kernel


def cbam_pallas(x, w1, w2, wconv, nb=None):
    N, C, H, W = x.shape
    HW = H * W
    hidden = w1.shape[0]
    # TODO(synk): generalize the flat-roll conv path to H*W not a multiple of 128.
    assert HW % 128 == 0, "H*W must be a multiple of the 128-lane vreg width"

    if nb is None:
        nb = _pick_nb(N, C, HW, x.dtype.itemsize)
    assert N % nb == 0, (N, nb)

    # Wrapper-side layout plumbing: lane-dense (H*W) last dim.
    x_flat = x.reshape(N, C, HW)
    # Conv-tap matrix for the MXU step: wmat[kw, c*KS + kh] = wconv[0, c, kh, kw].
    wmat = jnp.transpose(wconv[0].astype(jnp.float32), (2, 0, 1)).reshape(KS, 2 * KS)
    # Integer (h, w) coordinates of every flattened spatial position, used for
    # the zero-padding masks of the 7x7 "same" conv.
    hw_ids = jnp.stack(
        [jnp.repeat(jnp.arange(H, dtype=jnp.int32), W),
         jnp.tile(jnp.arange(W, dtype=jnp.int32), H)], axis=0)        # (2, HW)

    kernel = make_cbam_kernel(nb, C, H, W)
    grid_spec = pltpu.PrefetchScalarGridSpec(
        num_scalar_prefetch=0,
        grid=(N // nb,),
        in_specs=[
            pl.BlockSpec((nb, C, HW), lambda n: (n, 0, 0)),
            pl.BlockSpec((hidden, C), lambda n: (0, 0)),
            pl.BlockSpec((C, hidden), lambda n: (0, 0)),
            pl.BlockSpec((2, HW), lambda n: (0, 0)),
            pl.BlockSpec((KS, 2 * KS), lambda n: (0, 0)),
        ],
        out_specs=pl.BlockSpec((nb, C, HW), lambda n: (n, 0, 0)),
    )
    out_flat = pl.pallas_call(
        kernel,
        out_shape=jax.ShapeDtypeStruct((N, C, HW), x.dtype),
        grid_spec=grid_spec,
        compiler_params=pltpu.CompilerParams(
            dimension_semantics=("parallel",)),
    )(x_flat, w1.astype(jnp.float32), w2.astype(jnp.float32), hw_ids, wmat)
    return out_flat.reshape(N, C, H, W)


def cbam_ref(x, w1, w2, wconv):
    """Pure-JAX reference matching the PyTorch forward exactly."""
    avg_c = jnp.mean(x, axis=(2, 3))
    max_c = jnp.max(x, axis=(2, 3))

    def fc(v):
        return jax.nn.relu(v @ w1.T) @ w2.T

    scale = jax.nn.sigmoid(fc(avg_c) + fc(max_c))
    out1 = x * scale[:, :, None, None]
    avg_sp = jnp.mean(out1, axis=1, keepdims=True)
    max_sp = jnp.max(out1, axis=1, keepdims=True)
    sp_in = jnp.concatenate([avg_sp, max_sp], axis=1)
    conv = lax.conv_general_dilated(
        sp_in, wconv, window_strides=(1, 1), padding="SAME",
        dimension_numbers=("NCHW", "OIHW", "NCHW"))
    return out1 * jax.nn.sigmoid(conv)


if __name__ == "__main__":
    N, C, H, W = 2, 32, 16, 16
    ratio = 16
    hidden = C // ratio  # = 2

    key = jax.random.PRNGKey(0)
    kx, k1, k2, k3 = jax.random.split(key, 4)
    x = jax.random.normal(kx, (N, C, H, W), jnp.float32)
    # Deterministic synthetic weights (shapes match the PyTorch module __init__):
    w1 = jax.random.normal(k1, (hidden, C), jnp.float32) * 0.1        # fc[0]: Conv2d(C, C//r, 1)
    w2 = jax.random.normal(k2, (C, hidden), jnp.float32) * 0.1        # fc[2]: Conv2d(C//r, C, 1)
    wconv = jax.random.normal(k3, (1, 2, KS, KS), jnp.float32) * 0.1  # SpatialAttention conv 7x7

    out = jax.block_until_ready(cbam_pallas(x, w1, w2, wconv))

    ref = cbam_ref(x, w1, w2, wconv)
    assert jnp.allclose(out, ref, atol=1e-4, rtol=1e-4), \
        float(jnp.max(jnp.abs(out - ref)))
    print("KERNEL_OK")
</pallas_src>

<mosaic_0001>
module attributes {stable_mosaic.version = 11 : i64} {
  func.func @kernel(%arg0: i32, %arg1: memref<1x32x256xf32, #tpu.memory_space<vmem>>, %arg2: memref<2x32xf32, #tpu.memory_space<vmem>>, %arg3: memref<32x2xf32, #tpu.memory_space<vmem>>, %arg4: memref<2x256xi32, #tpu.memory_space<vmem>>, %arg5: memref<7x14xf32, #tpu.memory_space<vmem>>, %arg6: memref<1x32x256xf32, #tpu.memory_space<vmem>>) attributes {dimension_semantics = [#tpu.dimension_semantics<parallel>], iteration_bounds = array<i64: 2>, scalar_prefetch = 0 : i64, scratch_operands = 0 : i64, tpu.core_type = #tpu.core_type<tc>, window_params = [{transform_indices = @transform_0, window_bounds = array<i64: 1, 32, 256>}, {pipeline_mode = #tpu.pipeline_mode<synchronous>, transform_indices = @transform_1, window_bounds = array<i64: 2, 32>}, {pipeline_mode = #tpu.pipeline_mode<synchronous>, transform_indices = @transform_2, window_bounds = array<i64: 32, 2>}, {pipeline_mode = #tpu.pipeline_mode<synchronous>, transform_indices = @transform_3, window_bounds = array<i64: 2, 256>}, {pipeline_mode = #tpu.pipeline_mode<synchronous>, transform_indices = @transform_4, window_bounds = array<i64: 7, 14>}, {transform_indices = @transform_5, window_bounds = array<i64: 1, 32, 256>}]} {
    %c0 = arith.constant 0 : index
    %c0_0 = arith.constant 0 : index
    %0 = vector.load %arg2[%c0, %c0_0] : memref<2x32xf32, #tpu.memory_space<vmem>>, vector<2x32xf32>
    %c0_1 = arith.constant 0 : index
    %c0_2 = arith.constant 0 : index
    %1 = vector.load %arg3[%c0_1, %c0_2] : memref<32x2xf32, #tpu.memory_space<vmem>>, vector<32x2xf32>
    %c0_3 = arith.constant 0 : index
    %c0_4 = arith.constant 0 : index
    %2 = vector.load %arg5[%c0_3, %c0_4] : memref<7x14xf32, #tpu.memory_space<vmem>>, vector<7x14xf32>
    %c0_5 = arith.constant 0 : index
    %c0_6 = arith.constant 0 : index
    %c0_7 = arith.constant 0 : index
    %3 = vector.load %arg1[%c0_5, %c0_6, %c0_7] : memref<1x32x256xf32, #tpu.memory_space<vmem>>, vector<1x32x256xf32>
    %4 = vector.shape_cast %3 : vector<1x32x256xf32> to vector<32x256xf32>
    %cst = arith.constant 1.000000e+00 : f32
    %5 = vector.broadcast %cst : f32 to vector<256x1xf32>
    %cst_8 = arith.constant dense<0.000000e+00> : vector<32x1xf32>
    %6 = tpu.matmul %4, %5, %cst_8 {dimension_numbers = #tpu.dot_dimension_numbers<[1], [0], [0], [1], [0, 0, 1, 1], [], []>} : vector<32x256xf32>, vector<256x1xf32>, vector<32x1xf32> -> vector<32x1xf32>
    %cst_9 = arith.constant 3.906250e-03 : f32
    %7 = vector.broadcast %cst_9 : f32 to vector<32x1xf32>
    %8 = arith.mulf %6, %7 : vector<32x1xf32>
    %cst_10 = arith.constant dense<0xFF800000> : vector<32xf32>
    %9 = vector.multi_reduction <maximumf>, %4, %cst_10 [1] : vector<32x256xf32> to vector<32xf32>
    %10 = vector.shape_cast %9 : vector<32xf32> to vector<32x1xf32>
    %11 = tpu.concatenate %8, %10 in 1 : vector<32x1xf32>, vector<32x1xf32> -> vector<32x2xf32>
    %cst_11 = arith.constant dense<0.000000e+00> : vector<2x2xf32>
    %12 = tpu.matmul %0, %11, %cst_11 {dimension_numbers = #tpu.dot_dimension_numbers<[1], [0], [0], [1], [0, 0, 1, 1], [], []>} : vector<2x32xf32>, vector<32x2xf32>, vector<2x2xf32> -> vector<2x2xf32>
    %cst_12 = arith.constant 0.000000e+00 : f32
    %13 = vector.broadcast %cst_12 : f32 to vector<2x2xf32>
    %14 = arith.maximumf %12, %13 : vector<2x2xf32>
    %cst_13 = arith.constant dense<0.000000e+00> : vector<32x2xf32>
    %15 = tpu.matmul %1, %14, %cst_13 {dimension_numbers = #tpu.dot_dimension_numbers<[1], [0], [0], [1], [0, 0, 1, 1], [], []>} : vector<32x2xf32>, vector<2x2xf32>, vector<32x2xf32> -> vector<32x2xf32>
    %16 = vector.extract_strided_slice %15 {offsets = [0, 0], sizes = [32, 1], strides = [1, 1]} : vector<32x2xf32> to vector<32x1xf32>
    %17 = vector.extract_strided_slice %15 {offsets = [0, 1], sizes = [32, 1], strides = [1, 1]} : vector<32x2xf32> to vector<32x1xf32>
    %18 = arith.addf %16, %17 : vector<32x1xf32>
    %19 = arith.negf %18 : vector<32x1xf32>
    %20 = math.exp %19 : vector<32x1xf32>
    %cst_14 = arith.constant 1.000000e+00 : f32
    %21 = vector.broadcast %cst_14 : f32 to vector<32x1xf32>
    %22 = arith.addf %21, %20 : vector<32x1xf32>
    %23 = arith.divf %21, %22 : vector<32x1xf32>
    %24 = vector.broadcast %23 : vector<32x1xf32> to vector<32x256xf32>
    %25 = arith.mulf %4, %24 : vector<32x256xf32>
    %c0_15 = arith.constant 0 : index
    %c0_16 = arith.constant 0 : index
    %26 = vector.load %arg4[%c0_15, %c0_16] : memref<2x256xi32, #tpu.memory_space<vmem>>, vector<2x256xi32>
    %27 = vector.extract_strided_slice %26 {offsets = [0, 0], sizes = [1, 256], strides = [1, 1]} : vector<2x256xi32> to vector<1x256xi32>
    %28 = vector.extract_strided_slice %26 {offsets = [1, 0], sizes = [1, 256], strides = [1, 1]} : vector<2x256xi32> to vector<1x256xi32>
    %c3_i32 = arith.constant 3 : i32
    %29 = vector.broadcast %c3_i32 : i32 to vector<1x256xi32>
    %30 = arith.cmpi sge, %27, %29 : vector<1x256xi32>
    %c3_i32_17 = arith.constant 3 : i32
    %31 = vector.broadcast %c3_i32_17 : i32 to vector<1x256xi32>
    %32 = arith.cmpi sge, %28, %31 : vector<1x256xi32>
    %c2_i32 = arith.constant 2 : i32
    %33 = vector.broadcast %c2_i32 : i32 to vector<1x256xi32>
    %34 = arith.cmpi sge, %27, %33 : vector<1x256xi32>
    %c2_i32_18 = arith.constant 2 : i32
    %35 = vector.broadcast %c2_i32_18 : i32 to vector<1x256xi32>
    %36 = arith.cmpi sge, %28, %35 : vector<1x256xi32>
    %c1_i32 = arith.constant 1 : i32
    %37 = vector.broadcast %c1_i32 : i32 to vector<1x256xi32>
    %38 = arith.cmpi sge, %27, %37 : vector<1x256xi32>
    %c1_i32_19 = arith.constant 1 : i32
    %39 = vector.broadcast %c1_i32_19 : i32 to vector<1x256xi32>
    %40 = arith.cmpi sge, %28, %39 : vector<1x256xi32>
    %c15_i32 = arith.constant 15 : i32
    %41 = vector.broadcast %c15_i32 : i32 to vector<1x256xi32>
    %42 = arith.cmpi slt, %27, %41 : vector<1x256xi32>
    %c15_i32_20 = arith.constant 15 : i32
    %43 = vector.broadcast %c15_i32_20 : i32 to vector<1x256xi32>
    %44 = arith.cmpi slt, %28, %43 : vector<1x256xi32>
    %c14_i32 = arith.constant 14 : i32
    %45 = vector.broadcast %c14_i32 : i32 to vector<1x256xi32>
    %46 = arith.cmpi slt, %27, %45 : vector<1x256xi32>
    %c14_i32_21 = arith.constant 14 : i32
    %47 = vector.broadcast %c14_i32_21 : i32 to vector<1x256xi32>
    %48 = arith.cmpi slt, %28, %47 : vector<1x256xi32>
    %c13_i32 = arith.constant 13 : i32
    %49 = vector.broadcast %c13_i32 : i32 to vector<1x256xi32>
    %50 = arith.cmpi slt, %27, %49 : vector<1x256xi32>
    %c13_i32_22 = arith.constant 13 : i32
    %51 = vector.broadcast %c13_i32_22 : i32 to vector<1x256xi32>
    %52 = arith.cmpi slt, %28, %51 : vector<1x256xi32>
    %cst_23 = arith.constant 1.000000e+00 : f32
    %53 = vector.broadcast %cst_23 : f32 to vector<1x32xf32>
    %cst_24 = arith.constant dense<0.000000e+00> : vector<1x256xf32>
    %54 = tpu.matmul %53, %25, %cst_24 {dimension_numbers = #tpu.dot_dimension_numbers<[1], [0], [0], [1], [0, 0, 1, 1], [], []>} : vector<1x32xf32>, vector<32x256xf32>, vector<1x256xf32> -> vector<1x256xf32>
    %cst_25 = arith.constant 3.125000e-02 : f32
    %55 = vector.broadcast %cst_25 : f32 to vector<1x256xf32>
    %56 = arith.mulf %54, %55 : vector<1x256xf32>
    %cst_26 = arith.constant dense<0xFF800000> : vector<256xf32>
    %57 = vector.multi_reduction <maximumf>, %25, %cst_26 [0] : vector<32x256xf32> to vector<256xf32>
    %58 = vector.shape_cast %57 : vector<256xf32> to vector<1x256xf32>
    %c48_i32 = arith.constant 48 : i32
    %59 = tpu.dynamic_rotate %56 by %c48_i32 dim 1 : vector<1x256xf32>, i32 -> vector<1x256xf32>
    %cst_27 = arith.constant 0.000000e+00 : f32
    %60 = vector.broadcast %cst_27 : f32 to vector<1x256xf32>
    %61 = arith.select %30, %59, %60 : vector<1x256xi1>, vector<1x256xf32>
    %c32_i32 = arith.constant 32 : i32
    %62 = tpu.dynamic_rotate %56 by %c32_i32 dim 1 : vector<1x256xf32>, i32 -> vector<1x256xf32>
    %cst_28 = arith.constant 0.000000e+00 : f32
    %63 = vector.broadcast %cst_28 : f32 to vector<1x256xf32>
    %64 = arith.select %34, %62, %63 : vector<1x256xi1>, vector<1x256xf32>
    %c16_i32 = arith.constant 16 : i32
    %65 = tpu.dynamic_rotate %56 by %c16_i32 dim 1 : vector<1x256xf32>, i32 -> vector<1x256xf32>
    %cst_29 = arith.constant 0.000000e+00 : f32
    %66 = vector.broadcast %cst_29 : f32 to vector<1x256xf32>
    %67 = arith.select %38, %65, %66 : vector<1x256xi1>, vector<1x256xf32>
    %c240_i32 = arith.constant 240 : i32
    %68 = tpu.dynamic_rotate %56 by %c240_i32 dim 1 : vector<1x256xf32>, i32 -> vector<1x256xf32>
    %cst_30 = arith.constant 0.000000e+00 : f32
    %69 = vector.broadcast %cst_30 : f32 to vector<1x256xf32>
    %70 = arith.select %42, %68, %69 : vector<1x256xi1>, vector<1x256xf32>
    %c224_i32 = arith.constant 224 : i32
    %71 = tpu.dynamic_rotate %56 by %c224_i32 dim 1 : vector<1x256xf32>, i32 -> vector<1x256xf32>
    %cst_31 = arith.constant 0.000000e+00 : f32
    %72 = vector.broadcast %cst_31 : f32 to vector<1x256xf32>
    %73 = arith.select %46, %71, %72 : vector<1x256xi1>, vector<1x256xf32>
    %c208_i32 = arith.constant 208 : i32
    %74 = tpu.dynamic_rotate %56 by %c208_i32 dim 1 : vector<1x256xf32>, i32 -> vector<1x256xf32>
    %cst_32 = arith.constant 0.000000e+00 : f32
    %75 = vector.broadcast %cst_32 : f32 to vector<1x256xf32>
    %76 = arith.select %50, %74, %75 : vector<1x256xi1>, vector<1x256xf32>
    %c48_i32_33 = arith.constant 48 : i32
    %77 = tpu.dynamic_rotate %58 by %c48_i32_33 dim 1 : vector<1x256xf32>, i32 -> vector<1x256xf32>
    %cst_34 = arith.constant 0.000000e+00 : f32
    %78 = vector.broadcast %cst_34 : f32 to vector<1x256xf32>
    %79 = arith.select %30, %77, %78 : vector<1x256xi1>, vector<1x256xf32>
    %c32_i32_35 = arith.constant 32 : i32
    %80 = tpu.dynamic_rotate %58 by %c32_i32_35 dim 1 : vector<1x256xf32>, i32 -> vector<1x256xf32>
    %cst_36 = arith.constant 0.000000e+00 : f32
    %81 = vector.broadcast %cst_36 : f32 to vector<1x256xf32>
    %82 = arith.select %34, %80, %81 : vector<1x256xi1>, vector<1x256xf32>
    %c16_i32_37 = arith.constant 16 : i32
    %83 = tpu.dynamic_rotate %58 by %c16_i32_37 dim 1 : vector<1x256xf32>, i32 -> vector<1x256xf32>
    %cst_38 = arith.constant 0.000000e+00 : f32
    %84 = vector.broadcast %cst_38 : f32 to vector<1x256xf32>
    %85 = arith.select %38, %83, %84 : vector<1x256xi1>, vector<1x256xf32>
    %c240_i32_39 = arith.constant 240 : i32
    %86 = tpu.dynamic_rotate %58 by %c240_i32_39 dim 1 : vector<1x256xf32>, i32 -> vector<1x256xf32>
    %cst_40 = arith.constant 0.000000e+00 : f32
    %87 = vector.broadcast %cst_40 : f32 to vector<1x256xf32>
    %88 = arith.select %42, %86, %87 : vector<1x256xi1>, vector<1x256xf32>
    %c224_i32_41 = arith.constant 224 : i32
    %89 = tpu.dynamic_rotate %58 by %c224_i32_41 dim 1 : vector<1x256xf32>, i32 -> vector<1x256xf32>
    %cst_42 = arith.constant 0.000000e+00 : f32
    %90 = vector.broadcast %cst_42 : f32 to vector<1x256xf32>
    %91 = arith.select %46, %89, %90 : vector<1x256xi1>, vector<1x256xf32>
    %c208_i32_43 = arith.constant 208 : i32
    %92 = tpu.dynamic_rotate %58 by %c208_i32_43 dim 1 : vector<1x256xf32>, i32 -> vector<1x256xf32>
    %cst_44 = arith.constant 0.000000e+00 : f32
    %93 = vector.broadcast %cst_44 : f32 to vector<1x256xf32>
    %94 = arith.select %50, %92, %93 : vector<1x256xi1>, vector<1x256xf32>
    %95 = tpu.concatenate %61, %64, %67, %56, %70, %73, %76, %79, %82, %85, %58, %88, %91, %94 in 0 : vector<1x256xf32>, vector<1x256xf32>, vector<1x256xf32>, vector<1x256xf32>, vector<1x256xf32>, vector<1x256xf32>, vector<1x256xf32>, vector<1x256xf32>, vector<1x256xf32>, vector<1x256xf32>, vector<1x256xf32>, vector<1x256xf32>, vector<1x256xf32>, vector<1x256xf32> -> vector<14x256xf32>
    %cst_45 = arith.constant dense<0.000000e+00> : vector<7x256xf32>
    %96 = tpu.matmul %2, %95, %cst_45 {dimension_numbers = #tpu.dot_dimension_numbers<[1], [0], [0], [1], [0, 0, 1, 1], [], []>} : vector<7x14xf32>, vector<14x256xf32>, vector<7x256xf32> -> vector<7x256xf32>
    %97 = vector.extract_strided_slice %96 {offsets = [3, 0], sizes = [1, 256], strides = [1, 1]} : vector<7x256xf32> to vector<1x256xf32>
    %98 = vector.extract_strided_slice %96 {offsets = [0, 0], sizes = [1, 256], strides = [1, 1]} : vector<7x256xf32> to vector<1x256xf32>
    %c3_i32_46 = arith.constant 3 : i32
    %99 = tpu.dynamic_rotate %98 by %c3_i32_46 dim 1 : vector<1x256xf32>, i32 -> vector<1x256xf32>
    %cst_47 = arith.constant 0.000000e+00 : f32
    %100 = vector.broadcast %cst_47 : f32 to vector<1x256xf32>
    %101 = arith.select %32, %99, %100 : vector<1x256xi1>, vector<1x256xf32>
    %102 = arith.addf %97, %101 : vector<1x256xf32>
    %103 = vector.extract_strided_slice %96 {offsets = [1, 0], sizes = [1, 256], strides = [1, 1]} : vector<7x256xf32> to vector<1x256xf32>
    %c2_i32_48 = arith.constant 2 : i32
    %104 = tpu.dynamic_rotate %103 by %c2_i32_48 dim 1 : vector<1x256xf32>, i32 -> vector<1x256xf32>
    %cst_49 = arith.constant 0.000000e+00 : f32
    %105 = vector.broadcast %cst_49 : f32 to vector<1x256xf32>
    %106 = arith.select %36, %104, %105 : vector<1x256xi1>, vector<1x256xf32>
    %107 = arith.addf %102, %106 : vector<1x256xf32>
    %108 = vector.extract_strided_slice %96 {offsets = [2, 0], sizes = [1, 256], strides = [1, 1]} : vector<7x256xf32> to vector<1x256xf32>
    %c1_i32_50 = arith.constant 1 : i32
    %109 = tpu.dynamic_rotate %108 by %c1_i32_50 dim 1 : vector<1x256xf32>, i32 -> vector<1x256xf32>
    %cst_51 = arith.constant 0.000000e+00 : f32
    %110 = vector.broadcast %cst_51 : f32 to vector<1x256xf32>
    %111 = arith.select %40, %109, %110 : vector<1x256xi1>, vector<1x256xf32>
    %112 = arith.addf %107, %111 : vector<1x256xf32>
    %113 = vector.extract_strided_slice %96 {offsets = [4, 0], sizes = [1, 256], strides = [1, 1]} : vector<7x256xf32> to vector<1x256xf32>
    %c255_i32 = arith.constant 255 : i32
    %114 = tpu.dynamic_rotate %113 by %c255_i32 dim 1 : vector<1x256xf32>, i32 -> vector<1x256xf32>
    %cst_52 = arith.constant 0.000000e+00 : f32
    %115 = vector.broadcast %cst_52 : f32 to vector<1x256xf32>
    %116 = arith.select %44, %114, %115 : vector<1x256xi1>, vector<1x256xf32>
    %117 = arith.addf %112, %116 : vector<1x256xf32>
    %118 = vector.extract_strided_slice %96 {offsets = [5, 0], sizes = [1, 256], strides = [1, 1]} : vector<7x256xf32> to vector<1x256xf32>
    %c254_i32 = arith.constant 254 : i32
    %119 = tpu.dynamic_rotate %118 by %c254_i32 dim 1 : vector<1x256xf32>, i32 -> vector<1x256xf32>
    %cst_53 = arith.constant 0.000000e+00 : f32
    %120 = vector.broadcast %cst_53 : f32 to vector<1x256xf32>
    %121 = arith.select %48, %119, %120 : vector<1x256xi1>, vector<1x256xf32>
    %122 = arith.addf %117, %121 : vector<1x256xf32>
    %123 = vector.extract_strided_slice %96 {offsets = [6, 0], sizes = [1, 256], strides = [1, 1]} : vector<7x256xf32> to vector<1x256xf32>
    %c253_i32 = arith.constant 253 : i32
    %124 = tpu.dynamic_rotate %123 by %c253_i32 dim 1 : vector<1x256xf32>, i32 -> vector<1x256xf32>
    %cst_54 = arith.constant 0.000000e+00 : f32
    %125 = vector.broadcast %cst_54 : f32 to vector<1x256xf32>
    %126 = arith.select %52, %124, %125 : vector<1x256xi1>, vector<1x256xf32>
    %127 = arith.addf %122, %126 : vector<1x256xf32>
    %128 = arith.negf %127 : vector<1x256xf32>
    %129 = math.exp %128 : vector<1x256xf32>
    %cst_55 = arith.constant 1.000000e+00 : f32
    %130 = vector.broadcast %cst_55 : f32 to vector<1x256xf32>
    %131 = arith.addf %130, %129 : vector<1x256xf32>
    %132 = arith.divf %130, %131 : vector<1x256xf32>
    %133 = vector.broadcast %132 : vector<1x256xf32> to vector<32x256xf32>
    %134 = arith.mulf %25, %133 : vector<32x256xf32>
    %c0_56 = arith.constant 0 : index
    %c0_57 = arith.constant 0 : index
    %c0_58 = arith.constant 0 : index
    %135 = vector.load %arg6[%c0_56, %c0_57, %c0_58] : memref<1x32x256xf32, #tpu.memory_space<vmem>>, vector<1x32x256xf32>
    %136 = vector.shape_cast %135 : vector<1x32x256xf32> to vector<32x256xf32>
    %137 = vector.shape_cast %134 : vector<32x256xf32> to vector<1x32x256xf32>
    tpu.vector_store %arg6[%c0_56, %c0_57, %c0_58], %137 {strides = array<i32>} : memref<1x32x256xf32, #tpu.memory_space<vmem>>, vector<1x32x256xf32>,
    return
  }
  func.func @transform_0(%arg0: i32) -> (i32, i32, i32) {
    %c0_i32 = arith.constant 0 : i32
    %c0_i32_0 = arith.constant 0 : i32
    %c0_i32_1 = arith.constant 0 : i32
    return %arg0, %c0_i32, %c0_i32_0 : i32, i32, i32
  }
  func.func @transform_1(%arg0: i32) -> (i32, i32) {
    %c0_i32 = arith.constant 0 : i32
    %c0_i32_0 = arith.constant 0 : i32
    %c0_i32_1 = arith.constant 0 : i32
    return %c0_i32, %c0_i32_0 : i32, i32
  }
  func.func @transform_2(%arg0: i32) -> (i32, i32) {
    %c0_i32 = arith.constant 0 : i32
    %c0_i32_0 = arith.constant 0 : i32
    %c0_i32_1 = arith.constant 0 : i32
    return %c0_i32, %c0_i32_0 : i32, i32
  }
  func.func @transform_3(%arg0: i32) -> (i32, i32) {
    %c0_i32 = arith.constant 0 : i32
    %c0_i32_0 = arith.constant 0 : i32
    %c0_i32_1 = arith.constant 0 : i32
    return %c0_i32, %c0_i32_0 : i32, i32
  }
  func.func @transform_4(%arg0: i32) -> (i32, i32) {
    %c0_i32 = arith.constant 0 : i32
    %c0_i32_0 = arith.constant 0 : i32
    %c0_i32_1 = arith.constant 0 : i32
    return %c0_i32, %c0_i32_0 : i32, i32
  }
  func.func @transform_5(%arg0: i32) -> (i32, i32, i32) {
    %c0_i32 = arith.constant 0 : i32
    %c0_i32_0 = arith.constant 0 : i32
    %c0_i32_1 = arith.constant 0 : i32
    return %arg0, %c0_i32, %c0_i32_0 : i32, i32, i32
  }
}

</mosaic_0001>

<bundles_post_ra>
// kernel: tpu_custom_call.1
= control target key start
LH: loop header
LB: loop body
LE: loop exit
PB: predicated region body
PF: predicated region fallthrough
CT: control target
= control target key end

     0   :  { %10 = vsyncpa [#allocation3], 0  ;;  %s2466_s0 = inlined_call_operand.hbm [shape: f32[2,32,256], index: 0, kind: input, shape index: {}]   ;;  %s2467_s1 = inlined_call_operand.vmem [shape: f32[2,32], index: 1, kind: input, shape index: {}]   ;;  %s2468_s2 = inlined_call_operand.vmem [shape: f32[32,2], index: 2, kind: input, shape index: {}]   ;;  %s2469_s3 = inlined_call_operand.vmem [shape: s32[2,256], index: 3, kind: input, shape index: {}]   ;;  %s2470_s4 = inlined_call_operand.vmem [shape: f32[7,14], index: 4, kind: input, shape index: {}]   ;;  %s2471_s5 = inlined_call_operand.hbm [shape: f32[2,32,256], index: 5, kind: output, shape index: {}]  }
   0x1   :  { %12 = vsyncpa [#allocation3 + $0x1], 0 }
   0x2   :  { %13 = vsyncpa [#allocation4], 0 }
   0x3   :  { %15 = vsyncpa [#allocation4 + $0x1], 0  ;;  %s1918_s18 = smov 0   ;;  %s1920_s19 = smov 0  }
   0x4   :  { %s1922_s20 = smov 0   ;;  %s1924_s21 = smov 0  }
   0x5 LB: > { %s1939_s22 = sadd.s32 4294967295, %s1861_s21   ;;  %s1529_s23 = sadd.s32 4294967294, %s1861_s21   ;;  %s1861_s21 = sphi %s1924_s21, %s2484_s21   ;;  %s1857_s20 = sphi %s1922_s20, %s2483_s20   ;;  %s1853_s19 = sphi %s1920_s19, %s2482_s19   ;;  %s1849_s18 = sphi %s1918_s18, %s2481_s18  }
   0x6   : > { %s1943_s24 = sadd.s32 1, %s1861_s21   ;;  %s28_s25 = sadd.s32 1, %s1857_s20 }
   0x7   : > { %s25_s26 = ssub.s32 %s1861_s21, %s1943_s24  ;;  %p35_p0 = scmp.ne.s32.totalorder %s1857_s20, %s1853_s19 }
   0x8   : > { %p26_p1 = scmp.eq.s32.totalorder %s25_s26, 0  ;;  %p36_p2 = scmp.eq.s32.totalorder %s1861_s21, 0 }
   0x9   : > { %p41_p3 = scmp.ne.s32.totalorder %s1853_s19, %s1849_s18  ;;  %p42_p4 = scmp.eq.s32.totalorder %s1939_s22, 0 }
   0xa   : > { %s1955_s27 = scalar_select %p26_p1, %s1857_s20, %s28_s25  }
   0xb   : > { %p1957_p5 = por %p36_p2, %p35_p0  ;;  %p1961_p6 = por %p42_p4, %p41_p3 }
   0xc   : > { %p149_p7 = scmp.eq.s32.totalorder %s1939_s22, 1  ;;  %p155_p8 = scmp.eq.s32.totalorder %s1529_s23, 1 }
   0xd   : > { %p1682_p10 = scmp.lt.s32.totalorder %s1861_s21, 2  ;;  %s187_s7 = sand.u32 1, %s1857_s20  }
   0xe   : > { %p1968_p11 = por %p149_p7, %p35_p0  ;;  %p1972_p12 = por %p155_p8, %p41_p3 }
   0xf   : > { %s1559_s8 = sshll.u32 %s1861_s21, 10  ;;  %s1532_s9 = sshll.u32 %s187_s7, 6 }
  0x10   : > { %s2475_s30 = scalar_select %p1968_p11, 1, 0 }
  0x11   : > { %s2476_s6 = scalar_select %p1972_p12, 1, 0 }
  0x12   : > { %s1981_s12 = scalar_lea.hbm %s2466_s0, %s1559_s8  ;;  %s191_s13 = scalar_lea.vmem [#allocation2], %s1532_s9 }
  0x13   : > { %s198_s14 = sshll.u32 %s191_s13, 4  ;;  %p1985_p13 = pnand %p1682_p10, %p1957_p5  ;;  %s1989_s14 = int_to_ptr.vmem [resolvable:$true] %s198_s14 }
  0x14   : > { %s1991_s16 = scalar_lea.sflag [#allocation3], %s187_s7  ;;  %s1765_s17 = scalar_lea.hbm %s1981_s12, 1024 }
  0x15   : > { %p1766_p0 = scmp.ne.s32.totalorder %s1981_s12, %s1765_s17  ;;  %p1767_p1 = pneg %p1985_p13 }
  0x16   : > { %s1770_s26 = scalar_lea.hbm %s2466_s0, 2048  ;;  %p1771_p4 = scmp.lt.u32.totalorder %s1981_s12, %s2466_s0 }
  0x17   : > { %p1768_p2 = pnand %p1767_p1, %p1766_p0  ;;  %p1772_p5 = scmp.lt.u32.totalorder %s1770_s26, %s1765_s17 }
  0x18   : > { %p1774_p8 = scmp.lt.u32.totalorder %s1765_s17, %s1981_s12 }
  0x19   : > { %p1769_p3 = pneg %p1768_p2  ;;  %p1773_p7 = por %p1772_p5, %p1771_p4 }
  0x1b   : > { %p1775_p10 = por %p1774_p8, %p1773_p7 }
  0x1d   : > { %p1776_p9 = pnand %p1775_p10, %p1769_p3 }
  0x1f   : > { %1779 = shalt.err (!%p1776_p9)
}
  0x20   : > { %s1780_s7 = scalar_lea.vmem %s1989_s14, 1024  ;;  %s1863_s9 = smov [#allocation2]  }
  0x21   : > { %p1781_p0 = scmp.ne.s32.totalorder %s1989_s14, %s1780_s7  ;;  %s1785_s10 = sshll.u32 %s1863_s9, 4  ;;  %s1786_s10 = int_to_ptr.vmem [resolvable:$false] %s1785_s10 }
  0x22   : > { %s1787_s11 = scalar_lea.vmem %s1786_s10, 2048  ;;  %p1788_p11 = scmp.lt.s32.totalorder %s1989_s14, %s1786_s10 }
  0x23   : > { %p1783_p2 = pnand %p1781_p0, %p1767_p1  ;;  %p1789_p4 = scmp.lt.s32.totalorder %s1787_s11, %s1780_s7 }
  0x25   : > { %p1784_p12 = pneg %p1783_p2  ;;  %p1790_p5 = por %p1789_p4, %p1788_p11 }
  0x27   : > { %p1791_p7 = pnand %p1790_p5, %p1784_p12 }
  0x29   : > { %1794 = shalt.err (!%p1791_p7)
}
  0x2a   : > { %s1864_s13 = smov 256   ;;  %s1865_s17 = smov 16  }
  0x2b   : > { %1677 = dma.hbm_to_vmem [thread:$0]  (!%p1985_p13), %s1981_s12, 1024, %s1989_s14, %s1991_s16, %s1864_s13, %s1864_s13, %s1865_s17  }
  0x2c   : > { %p1535_p9 = scmp.ge.s32.totalorder %s1861_s21, 1  ;;  %p206_p1 = scmp.lt.s32.totalorder %s1861_s21, 3 }
  0x2e   : > { %p207_p3 = pnand %p1535_p9, %p206_p1 }
  0x2f   : > { %s2022_s23 = sand.u32 (!%p207_p3), 1, %s1853_s19  }
  0x30   : > { %210 = sbr.rel (%p207_p3) target bundleno = 1817 (0x719), region = 40  ;;  %s1536_s25 = sshll.u32 (!%p207_p3), %s2022_s23, 6 }
  0x31   : > { %s213_s26 = scalar_lea.sflag (!%p207_p3), [#allocation3], %s2022_s23  ;;  %s216_s28 = scalar_lea.vmem (!%p207_p3), [#allocation2], %s1536_s25 }
  0x37   : > { %1840 = dma.done.wait (%p1961_p6), %s213_s26, 1024  }
  0x38   : > { %1842 = vsyncadd (%p1961_p6), %s213_s26, 4294966272  ;;  %v1866_v0 = vmov 1.0|1.0   ;;  %v2032_v1 = vld [vmem:[%s216_s28 + $0x8] sm:$0xff]  ;;  %v2034_v2 = vld [vmem:[%s216_s28] sm:$0xff]  ;;  %v1867_v13 = vmov 0.0|0.0  }
  0x39   : > { %1634 = vmatprep.subr.bf16.mxu0 %v1866_v0  ;;  %321 = vmatprep.mubr.f32.mxu0 %v2032_v1  ;;  %v2037_v3 = vld [vmem:[%s216_s28 + $0x28] sm:$0xff]  ;;  %v2039_v4 = vld [vmem:[%s216_s28 + $0x20] sm:$0xff]  ;;  %v346_v5 = vmax.f32 %v2034_v2, %v2032_v1  ;;  %v2043_v6 = vld [vmem:[%s216_s28 + $0x18] sm:$0xff]  ;;  %vm1868_vm0 = vmmov 0   ;;  %v1869_v14 = vmov 0.0   ;;  %vm358_vm1 = vcmask 7168  }
  0x3a   : > { %1635 = vmatpush3.bf16.msra.mxu0 %v1866_v0  ;;  %v2045_v7 = vld [vmem:[%s216_s28 + $0x10] sm:$0xff]  ;;  %v352_v8 = vmax.f32 %v2039_v4, %v2037_v3  ;;  %v2049_v9 = vld [vmem:[%s216_s28 + $0x38] sm:$0xff]  ;;  %1650 = vmatprep.subr.bf16.mxu1 %v1867_v13  ;;  %v243_v41 = vld [vmem:[%s2467_s1] sm:$0x3]  ;;  %vm363_vm2 = vcmask 261120   ;;  %vm438_vm3 = vcmask 15360  }
  0x3b   : > { %1636 = vmatprep.subr.bf16.mxu0 %v1866_v0  ;;  %v2051_v10 = vld [vmem:[%s216_s28 + $0x30] sm:$0xff]  ;;  %347 = vmax.xlane.f32.xlu0 %v346_v5  ;;  %v349_v11 = vmax.f32 %v2045_v7, %v2043_v6  ;;  %v244_v42 = vld [vmem:[%s2468_s2] sm:$0xff]  ;;  %vm451_vm4 = vcmask 1041408   ;;  %v245_v46 = vld [vmem:[%s2468_s2 + $0x8] sm:$0xff]  ;;  %s1870_s13 = smov 127   ;;  %v1871_v53 = vmov 0  }
  0x3c   : > { %353 = vmax.xlane.f32.xlu1 %v352_v8  ;;  %v355_v12 = vmax.f32 %v2051_v10, %v2049_v9  ;;  %1623 = vmatprep.mubr.msk.f32.mxu1 %vm1868_vm0, %v1869_v14  ;;  %v246_v47 = vld [vmem:[%s2468_s2 + $0x10] sm:$0xff]  ;;  %v247_v48 = vld [vmem:[%s2468_s2 + $0x18] sm:$0xff]  ;;  %s1873_s17 = smov 32   ;;  %s1874_s26 = smov 16   ;;  %vm1075_vm12 = vcmask 1040384   ;;  %vm1080_vm15 = vcmask 1042432  }
  0x3d   : > { %1739 = vset.pattern.permute.xlu1 %v1871_v53  ;;  %1740 = vset.pattern.permute.xlu0 %v1871_v53  ;;  %s1875_s28 = smov 112   ;;  %s1876_s29 = smov 96  }
  0x3e   : > { %1637 = vmatpush3.bf16.msra.mxu0 %v1866_v0  ;;  %s1877_s12 = smov 48   ;;  %s1878_s14 = smov 80  }
  0x3f   : > { %1638 = vmatprep.subr.bf16.mxu0 %v1866_v0  ;;  %350 = vmax.xlane.f32.xlu0 %v349_v11  ;;  %s1881_s9 = smov 3   ;;  %s1882_s10 = smov 2  }
  0x40   : > { %356 = vmax.xlane.f32.xlu1 %v355_v12  ;;  %s1883_s11 = smov 1   ;;  %p2478_p11 = scmp.ne.s32.totalorder %s2475_s30, 0 }
  0x41   : > { %s1886_s8 = smov [#allocation5]  }
  0x42   : > { %1639 = vmatpush3.bf16.msra.mxu0 %v1866_v0  ;;  %s1799_s7 = sshll.u32 %s1886_s8, 4  ;;  %s1800_s7 = int_to_ptr.vmem [resolvable:$false] %s1799_s7 }
  0x43   : > { %1640 = vmatprep.subr.bf16.mxu0 %v1866_v0 }
  0x46   : > { %1641 = vmatpush3.bf16.msra.mxu0 %v1866_v0 }
  0x47   : > { %1642 = vmatprep.subr.bf16.mxu0 %v1866_v0 }
  0x4a   : > { %1643 = vmatpush3.bf16.msra.mxu0 %v1866_v0 }
  0x4b   : > { %1644 = vmatprep.subr.bf16.mxu0 %v1866_v0 }
  0x4e   : > { %1645 = vmatpush3.bf16.msra.mxu0 %v1866_v0 }
  0x4f   : > { %1646 = vmatprep.subr.bf16.mxu0 %v1866_v0 }
  0x52   : > { %1647 = vmatpush3.bf16.msra.mxu0 %v1866_v0 }
  0x53   : > { %1648 = vmatprep.subr.bf16.mxu0 %v1866_v0 }
  0x56   : > { %1649 = vmatpush3.bf16.msra.mxu0 %v1866_v0 }
  0x59   : > { %322 = vmatmul.mubr.f32.vlgmr.msra.gmra.mrb[0].mxu0 %v2034_v2 }
  0x5a   : > { %326 = vmatprep.mubr.f32.mxu0 %v2043_v6 }
  0x5d   : > { %327 = vmatmul.mubr.f32.gmra.mrb[2].mxu0 %v2045_v7 }
  0x5e   : > { %331 = vmatprep.mubr.f32.mxu0 %v2037_v3 }
  0x61   : > { %332 = vmatmul.mubr.f32.gmra.mrb[4].mxu0 %v2039_v4 }
  0x62   : > { %336 = vmatprep.mubr.f32.mxu0 %v2049_v9 }
  0x65   : > { %337 = vmatmul.mubr.f32.gmra.mrb[6].mxu0 %v2051_v10 }
  0xc8   : > { %v348_v17 = vpop.xlane.xlu0 %347 }
  0xc9   : > { %v354_v27 = vpop.xlane.xlu1 %353 }
  0xcc   : > { %v351_v23 = vpop.xlane.xlu0 %350 }
  0xcd   : > { %v357_v36 = vpop.xlane.xlu1 %356 }
 0x12c   : > { %v1593_v15 = vpop.f32.mrb[0].mxu0 }
 0x12d   : > { %v1594_v16 = vpop.f32.mrb[1].mxu0 }
 0x12e   : > { %v1595_v18 = vadd.f32 %v1594_v16, %v1593_v15 }
 0x130   : > { %v1596_v19 = vpop.f32.mrb[2].mxu0  ;;  %v342_v21 = vmul.f32 0.00390625, %v1595_v18 }
 0x131   : > { %v1597_v20 = vpop.f32.mrb[3].mxu0 }
 0x132   : > { %v1598_v22 = vadd.f32 %v1597_v20, %v1596_v19  ;;  %v359_v28 = vsel %vm358_vm1, %v342_v21, %v348_v17 }
 0x134   : > { %v343_v24 = vmul.f32 0.00390625, %v1598_v22  ;;  %v1599_v25 = vpop.f32.mrb[4].mxu0 }
 0x135   : > { %v1600_v26 = vpop.f32.mrb[5].mxu0 }
 0x136   : > { %v360_v29 = vsel %vm358_vm1, %v343_v24, %v351_v23  ;;  %v1601_v30 = vadd.f32 %v1600_v26, %v1599_v25 }
 0x137   : > { %v1651_v31 = vpack.c.bf16 %v360_v29, %v359_v28 }
 0x138   : > { %v1602_v32 = vpop.f32.mrb[6].mxu0  ;;  %v344_v34 = vmul.f32 0.00390625, %v1601_v30 }
 0x139   : > { %v1603_v33 = vpop.f32.mrb[7].mxu0  ;;  %1652 = vmatpush3.bf16.msra.mxu1 %v1651_v31 }
 0x13a   : > { %v1604_v35 = vadd.f32 %v1603_v33, %v1602_v32  ;;  %1653 = vmatprep.subr.bf16.mxu1 %v1867_v13  ;;  %v361_v38 = vsel %vm358_vm1, %v344_v34, %v354_v27 }
 0x13c   : > { %v345_v37 = vmul.f32 0.00390625, %v1604_v35 }
 0x13e   : > { %v362_v39 = vsel %vm358_vm1, %v345_v37, %v357_v36 }
 0x13f   : > { %v1654_v40 = vpack.c.bf16 %v362_v39, %v361_v38 }
 0x141   : > { %1655 = vmatpush3.bf16.msra.mxu1 %v1654_v40 }
 0x144   : > { %1624 = vmatmul.mubr.msk.f32.vlgmr.msra.gmra.mrb[0].mxu1 %vm363_vm2, %v243_v41  ;;  %v1872_v41 = vmov 1.0  }
 0x145   : > { %1628 = vmatprep.mubr.msk.f32.mxu1 %vm438_vm3, %v244_v42 }
 0x217   : > { %v433_v43 = vpop.f32.mrb[0].mxu1 }
 0x218   : > { %v437_v44 = vmax.f32 %v433_v43, 0.0  ;;  %v1625_v45 = vpop.f32.mrb[1].mxu1 }
 0x21a   : > { %1626 = vmatprep.subr.msk.mxu1 %vm451_vm4, %v437_v44 }
 0x21b   : > { %1627 = vmatpush3.msk.msra.mxu1 %vm451_vm4, %v437_v44 }
 0x21c   : > { %1629 = vmatmul.mubr.msk.f32.vlgmr.msra.gmra.mrb[2].mxu1 %vm438_vm3, %v245_v46 }
 0x21d   : > { %1631 = vmatprep.mubr.msk.f32.mxu1 %vm438_vm3, %v246_v47 }
 0x220   : > { %1632 = vmatmul.mubr.msk.f32.gmra.mrb[4].mxu1 %vm438_vm3, %v247_v48 }
 0x221   : > { %686 = vmatprep.mubr.f32.mxu1 %v1869_v14 }
 0x2ef   : > { %v1630_v49 = vpop.f32.mrb[2].mxu1 }
 0x2f0   : > { %546 = vrot.lane.b32.xlu1 %v1630_v49, %s1870_s13  ;;  %v521_v50 = vpop.f32.mrb[3].mxu1 }
 0x2f1   : > { %544 = vrot.lane.b32.xlu0 %v521_v50, %s1870_s13 }
 0x2f3   : > { %v1633_v51 = vpop.f32.mrb[4].mxu1 }
 0x2f4   : > { %v531_v52 = vpop.f32.mrb[5].mxu1 }
 0x2f5   : > { %548 = vrot.lane.b32.xlu1 %v531_v52, %s1870_s13 }
 0x2f9   : > { %550 = vrot.lane.b32.xlu1 %v1633_v51, %s1870_s13 }
 0x362   : > { %v547_v54 = vpop.permute.xlu1 %546 }
 0x363   : > { %v557_v55 = vadd.f32 %v1630_v49, %v547_v54  ;;  %v545_v56 = vpop.permute.xlu0 %544 }
 0x364   : > { %v556_v57 = vadd.f32 %v545_v56, %v521_v50 }
 0x365   : > { %v1545_v58 = vmul.f32 -1.442695, %v557_v55 }
 0x366   : > { %v1544_v59 = vmul.f32 -1.442695, %v556_v57 }
 0x367   : > { %1741 = vpow2.f32 %v1545_v58  ;;  %v549_v60 = vpop.permute.xlu1 %548  ;;  %v717_v58 = vlaneseq }
 0x368   : > { %1743 = vpow2.f32 %v1544_v59  ;;  %v558_v61 = vadd.f32 %v549_v60, %v531_v52 }
 0x369   : > { %v2170_v60 = vand.u32 127, %v717_v58 }
 0x36a   : > { %v1546_v62 = vmul.f32 -1.442695, %v558_v61 }
 0x36b   : > { %v551_v63 = vpop.permute.xlu1 %550  ;;  %vm757_vm5 = vcmp.lt.s32.totalorder %v2170_v60, 16  ;;  %vm738_vm6 = vcmp.lt.s32.totalorder %v2170_v60, 32  ;;  %vm776_vm7 = vcmp.lt.s32.totalorder %v2170_v60, 112  ;;  %vm795_vm9 = vcmp.lt.s32.totalorder %v2170_v60, 96 }
 0x36c   : > { %1745 = vpow2.f32 %v1546_v62  ;;  %v559_v0 = vadd.f32 %v1633_v51, %v551_v63  ;;  %v1879_v62 = vmov 1983009808   ;;  %vm719_vm11 = vcmp.lt.s32.totalorder %v2170_v60, 48 }
 0x36d   : > { %v726_v63 = vunpack.c.l.s4 %v1879_v62  ;;  %vm814_vm1 = vcmp.lt.s32.totalorder %v2170_v60, 80 }
 0x36e   : > { %v1547_v5 = vmul.f32 -1.442695, %v559_v0 }
 0x370   : > { %1747 = vpow2.f32 %v1547_v5 }
 0x371   : > { %v1742_v8 = vpop.eup %1741 }
 0x372   : > { %v1744_v11 = vpop.eup %1743  ;;  %v573_v12 = vadd.f32 1.0, %v1742_v8 }
 0x373   : > { %v572_v13 = vadd.f32 1.0, %v1744_v11  ;;  %v727_v11 = vunpack.c.0.s8 %v726_v63 }
 0x374   : > { %1749 = vrcp.f32 %v573_v12  ;;  %v2178_v12 = vshrl.u32 %v717_v58, 7 }
 0x375   : > { %1751 = vrcp.f32 %v572_v13 }
 0x376   : > { %v1746_v15 = vpop.eup %1745 }
 0x377   : > { %v574_v16 = vadd.f32 1.0, %v1746_v15 }
 0x379   : > { %1753 = vrcp.f32 %v574_v16 }
 0x37a   : > { %v1748_v17 = vpop.eup %1747 }
 0x37b   : > { %v575_v18 = vadd.f32 1.0, %v1748_v17 }
 0x37d   : > { %1755 = vrcp.f32 %v575_v18 }
 0x37e   : > { %v1750_v19 = vpop.eup %1749 }
 0x37f   : > { %v1752_v20 = vpop.eup %1751  ;;  %591 = vperm.xlu1 %1739, %v1750_v19   ;;  %v2186_v19 = vsub.s32 %v727_v11, %v2178_v12 }
 0x380   : > { %586 = vperm.xlu0 %1740, %v1752_v20  }
 0x383   : > { %v1754_v21 = vpop.eup %1753 }
 0x384   : > { %596 = vperm.xlu1 %1739, %v1754_v21  }
 0x387   : > { %v1756_v22 = vpop.eup %1755 }
 0x388   : > { %601 = vperm.xlu0 %1740, %v1756_v22   ;;  %v2191_v22 = vld [vmem:[%s2469_s3] sm:$0xf] }
 0x389   : > { %vm615_vm8 = vcmp.ge.s32.totalorder %v2191_v22, 1  ;;  %vm614_vm10 = vcmp.ge.s32.totalorder %v2191_v22, 2  ;;  %vm616_vm13 = vcmp.lt.s32.totalorder %v2191_v22, 15  ;;  %vm617_vm14 = vcmp.lt.s32.totalorder %v2191_v22, 14 }
 0x38a   : > { %vm613_vm0 = vcmp.ge.s32.totalorder %v2191_v22, 3  ;;  %vm618_vm3 = vcmp.lt.s32.totalorder %v2191_v22, 13 }
 0x3fe   : > { %v592_v23 = vpop.permute.xlu1 %591 }
 0x3ff   : > { %v2093_v24 = vmul.f32 %v592_v23, %v2045_v7  ;;  %v2096_v25 = vmul.f32 %v592_v23, %v2043_v6  ;;  %v587_v26 = vpop.permute.xlu0 %586 }
 0x400   : > { %v2099_v27 = vmul.f32 %v587_v26, %v2034_v2  ;;  %v2102_v28 = vmul.f32 %v587_v26, %v2032_v1 }
 0x402   : > { %v1658_v29 = vpack.c.bf16 %v2093_v24, %v2099_v27  ;;  %v1656_v30 = vpack.c.bf16 %v2096_v25, %v2102_v28 }
 0x403   : > { %v597_v31 = vpop.permute.xlu1 %596 }
 0x404   : > { %1657 = vmatprep.subr.bf16.mxu1 %v1656_v30  ;;  %v2109_v7 = vmul.f32 %v597_v31, %v2039_v4  ;;  %v2112_v6 = vmul.f32 %v597_v31, %v2037_v3 }
 0x405   : > { %1659 = vmatpush1.bf16.msra.mxu1 %v1658_v29 }
 0x406   : > { %v695_v33 = vmax.f32 %v2099_v27, %v2109_v7  ;;  %v704_v34 = vmax.f32 %v2102_v28, %v2112_v6 }
 0x407   : > { %v602_v2 = vpop.permute.xlu0 %601 }
 0x408   : > { %v2115_v32 = vmul.f32 %v602_v2, %v2051_v10  ;;  %v2118_v1 = vmul.f32 %v602_v2, %v2049_v9 }
 0x40a   : > { %v1662_v4 = vpack.c.bf16 %v2115_v32, %v2109_v7  ;;  %v696_v3 = vmax.f32 %v2093_v24, %v2115_v32  ;;  %v705_v35 = vmax.f32 %v2096_v25, %v2118_v1  ;;  %v1660_v10 = vpack.c.bf16 %v2118_v1, %v2112_v6 }
 0x40c   : > { %v697_v9 = vmax.f32 %v695_v33, %v696_v3  ;;  %v706_v36 = vmax.f32 %v704_v34, %v705_v35  ;;  %1661 = vmatprep.subr.bf16.mxu1 %v1660_v10  ;;  %v2203_v34 = vsub.s32 0, %v2178_v12 }
 0x40d   : > { %1663 = vmatpush1.bf16.msra.mxu1 %v1662_v4 }
 0x40e   : > { %v698_v37 = vrot.slane %v697_v9, 4  ;;  %v707_v38 = vrot.slane %v706_v36, 4 }
 0x410   : > { %v699_v39 = vmax.f32 %v697_v9, %v698_v37  ;;  %v708_v40 = vmax.f32 %v706_v36, %v707_v38  ;;  %1548 = vmatmul.mubr.msk.f32.vlgmr.msra.gmra.mrb[6].mxu1 %vm363_vm2, %v1872_v41  ;;  %v2217_v37 = vsub.s32 2, %v2178_v12  ;;  %vm1083_vm2 = vcmask 1043456  }
 0x411   : > { %1179 = vmatprep.mubr.f32.mxu1 %v1869_v14 }
 0x412   : > { %v700_v42 = vrot.slane %v699_v39, 2  ;;  %v709_v43 = vrot.slane %v708_v40, 2 }
 0x414   : > { %v701_v44 = vmax.f32 %v699_v39, %v700_v42  ;;  %v710_v45 = vmax.f32 %v708_v40, %v709_v43 }
 0x416   : > { %v702_v46 = vrot.slane %v701_v44, 1  ;;  %v711_v47 = vrot.slane %v710_v45, 1 }
 0x418   : > { %v2134_v48 = vmax.f32 %v701_v44, %v702_v46  ;;  %v2136_v49 = vmax.f32 %v710_v45, %v711_v47 }
 0x41a   : > { %849 = vrot.lane.b32.xlu0 %v2136_v49, %s1873_s17  ;;  %847 = vrot.lane.b32.xlu1 %v2134_v48, %s1873_s17 }
 0x41e   : > { %867 = vrot.lane.b32.xlu0 %v2136_v49, %s1874_s26  ;;  %865 = vrot.lane.b32.xlu1 %v2134_v48, %s1874_s26 }
 0x422   : > { %885 = vrot.lane.b32.xlu0 %v2136_v49, %s1875_s28  ;;  %883 = vrot.lane.b32.xlu1 %v2134_v48, %s1875_s28 }
 0x426   : > { %903 = vrot.lane.b32.xlu0 %v2136_v49, %s1876_s29  ;;  %901 = vrot.lane.b32.xlu1 %v2134_v48, %s1876_s29 }
 0x42a   : > { %831 = vrot.lane.b32.xlu0 %v2136_v49, %s1877_s12  ;;  %829 = vrot.lane.b32.xlu1 %v2134_v48, %s1877_s12 }
 0x48c   : > { %v848_v53 = vpop.permute.xlu1 %847  ;;  %v850_v54 = vpop.permute.xlu0 %849 }
 0x48d   : > { %v851_v13 = vsel %vm738_vm6, %v848_v53, %v850_v54  ;;  %v852_v15 = vsel %vm738_vm6, %v850_v54, %v848_v53 }
 0x48e   : > { %v855_v20 = vcombine.low %v852_v15, %v851_v13 }
 0x490   : > { %v866_v55 = vpop.permute.xlu1 %865  ;;  %v868_v56 = vpop.permute.xlu0 %867  ;;  %v862_v31 = vrot.slane %v855_v20, %v2186_v19 }
 0x491   : > { %v869_v5 = vsel %vm757_vm5, %v866_v55, %v868_v56  ;;  %v870_v8 = vsel %vm757_vm5, %v868_v56, %v866_v55 }
 0x492   : > { %v873_v17 = vcombine.low %v870_v8, %v869_v5  ;;  %v864_v38 = vsel %vm614_vm10, %v862_v31, 0.0 }
 0x493   : > { %v1028_v55 = vrot.slane %v864_v38, %v2217_v37 }
 0x494   : > { %v884_v57 = vpop.permute.xlu1 %883  ;;  %v886_v59 = vpop.permute.xlu0 %885  ;;  %v880_v23 = vrot.slane %v873_v17, %v2186_v19 }
 0x495   : > { %v887_v26 = vsel %vm776_vm7, %v884_v57, %v886_v59  ;;  %v888_v29 = vsel %vm776_vm7, %v886_v59, %v884_v57 }
 0x496   : > { %v891_v2 = vcombine.low %v887_v26, %v888_v29  ;;  %v882_v4 = vsel %vm615_vm8, %v880_v23, 0.0 }
 0x497   : > { %v1035_v41 = vrot.slane %v882_v4, %v2203_v34  ;;  %v1039_v45 = vrot.slane %v882_v4, %v2217_v37 }
 0x498   : > { %v902_v61 = vpop.permute.xlu1 %901  ;;  %v904_v0 = vpop.permute.xlu0 %903  ;;  %v898_v42 = vrot.slane %v891_v2, %v2186_v19 }
 0x499   : > { %v905_v35 = vsel %vm795_vm9, %v902_v61, %v904_v0  ;;  %v906_v10 = vsel %vm795_vm9, %v904_v0, %v902_v61  ;;  %v1096_v62 = vsel %vm1075_vm12, %v1028_v55, %v1039_v45 }
 0x49a   : > { %v909_v46 = vcombine.low %v905_v35, %v906_v10  ;;  %v2238_v58 = vsel %vm616_vm13, %v898_v42, 0.0  ;;  %v2260_v26 = vsel %vm451_vm4, %v1096_v62, %v2136_v49 }
 0x49b   : > { %v1046_v20 = vrot.slane %v2238_v58, %v2203_v34  ;;  %v1050_v29 = vrot.slane %v2238_v58, %v2217_v37 }
 0x49c   : > { %v830_v16 = vpop.permute.xlu1 %829  ;;  %v832_v18 = vpop.permute.xlu0 %831  ;;  %v916_v63 = vrot.slane %v909_v46, %v2186_v19 }
 0x49d   : > { %v833_v0 = vsel %vm719_vm11, %v830_v16, %v832_v18  ;;  %v834_v11 = vsel %vm719_vm11, %v832_v18, %v830_v16 }
 0x49e   : > { %v837_v31 = vcombine.low %v834_v11, %v833_v0 }
 0x4a0   : > { %v844_v42 = vrot.slane %v837_v31, %v2186_v19 }
 0x4e3   : > { %v688_v14 = vpop.f32.mrb[6].mxu1 }
 0x4e4   : > { %v2150_v50 = vmul.f32 0.03125, %v688_v14  ;;  %v690_v51 = vpop.f32.mrb[7].mxu1  ;;  %v1024_v14 = vrot.slane %v864_v38, %v2203_v34 }
 0x4e5   : > { %v2152_v52 = vmul.f32 0.03125, %v690_v51 }
 0x4e6   : > { %713 = vrot.lane.b32.xlu1 %v2150_v50, %s1877_s12  ;;  %v1095_v57 = vsel %vm1075_vm12, %v1024_v14, %v1035_v41  ;;  %v972_v55 = vrot.slane %v2150_v50, 5 }
 0x4e7   : > { %715 = vrot.lane.b32.xlu0 %v2152_v52, %s1877_s12  ;;  %v1097_v23 = vsel %vm451_vm4, %v1095_v57, %v2134_v48 }
 0x4e8   : > { %v1099_v35 = vsel %vm1080_vm15, %v1097_v23, %v1046_v20 }
 0x4ea   : > { %734 = vrot.lane.b32.xlu1 %v2150_v50, %s1873_s17 }
 0x4eb   : > { %736 = vrot.lane.b32.xlu0 %v2152_v52, %s1873_s17  ;;  %s1884_s17 = smov 126  }
 0x4ee   : > { %753 = vrot.lane.b32.xlu1 %v2150_v50, %s1874_s26 }
 0x4ef   : > { %755 = vrot.lane.b32.xlu0 %v2152_v52, %s1874_s26 }
 0x4f2   : > { %772 = vrot.lane.b32.xlu1 %v2150_v50, %s1875_s28 }
 0x4f3   : > { %774 = vrot.lane.b32.xlu0 %v2152_v52, %s1875_s28  ;;  %s1885_s28 = smov 125  }
 0x4f6   : > { %791 = vrot.lane.b32.xlu1 %v2150_v50, %s1876_s29 }
 0x4f7   : > { %793 = vrot.lane.b32.xlu0 %v2152_v52, %s1876_s29  ;;  %s242_s29 = scalar_lea.vmem [#allocation5], %s1536_s25  ;;  %s1443_s25 = scalar_lea.sflag [#allocation4], %s2022_s23 }
 0x4f8   : > { %s1456_s12 = sshll.u32 %s242_s29, 4  ;;  %s2421_s12 = int_to_ptr.vmem [resolvable:$true] %s1456_s12 }
 0x4f9   : > { %s1795_s16 = scalar_lea.vmem %s2421_s12, 1024  ;;  %p1802_p8 = scmp.lt.s32.totalorder %s2421_s12, %s1800_s7 }
 0x4fa   : > { %810 = vrot.lane.b32.xlu1 %v2150_v50, %s1878_s14  ;;  %p1796_p6 = scmp.ne.s32.totalorder %s2421_s12, %s1795_s16 }
 0x4fb   : > { %812 = vrot.lane.b32.xlu0 %v2152_v52, %s1878_s14 }
 0x4fc   : > { %p1797_p12 = pnand %p1796_p6, %p2478_p11 }
 0x4fe   : > { %919 = vrot.lane.b32.xlu1 %v2134_v48, %s1878_s14  ;;  %p1798_p13 = pneg %p1797_p12 }
 0x4ff   : > { %921 = vrot.lane.b32.xlu0 %v2136_v49, %s1878_s14 }
 0x558   : > { %v714_v21 = vpop.permute.xlu1 %713 }
 0x559   : > { %v716_v30 = vpop.permute.xlu0 %715 }
 0x55a   : > { %v720_v39 = vsel %vm719_vm11, %v714_v21, %v716_v30  ;;  %v721_v40 = vsel %vm719_vm11, %v716_v30, %v714_v21  ;;  %v2269_v30 = vsel %vm617_vm14, %v916_v63, 0.0  ;;  %vm1105_vm11 = vcmask 113664  }
 0x55b   : > { %v724_v51 = vcombine.low %v721_v40, %v720_v39  ;;  %v1061_v38 = vrot.slane %v2269_v30, %v2217_v37 }
 0x55c   : > { %v735_v33 = vpop.permute.xlu1 %734 }
 0x55d   : > { %v737_v3 = vpop.permute.xlu0 %736  ;;  %v731_v13 = vrot.slane %v724_v51, %v2186_v19 }
 0x55e   : > { %v739_v9 = vsel %vm738_vm6, %v735_v33, %v737_v3  ;;  %v740_v36 = vsel %vm738_vm6, %v737_v3, %v735_v33  ;;  %vm1092_vm6 = vcmask 1046528  }
 0x55f   : > { %v743_v43 = vcombine.low %v740_v36, %v739_v9  ;;  %v733_v49 = vsel %vm613_vm0, %v731_v13, 0.0  ;;  %v1057_v36 = vrot.slane %v2269_v30, %v2203_v34  ;;  %v846_v30 = vsel %vm613_vm0, %v844_v42, 0.0 }
 0x560   : > { %v754_v44 = vpop.permute.xlu1 %753 }
 0x561   : > { %v756_v47 = vpop.permute.xlu0 %755  ;;  %v750_v59 = vrot.slane %v743_v43, %v2186_v19  ;;  %v941_v43 = vrot.slane %v733_v49, %v2203_v34 }
 0x562   : > { %v758_v53 = vsel %vm757_vm5, %v754_v44, %v756_v47  ;;  %v759_v54 = vsel %vm757_vm5, %v756_v47, %v754_v44  ;;  %v945_v47 = vrot.slane %v733_v49, %v2217_v37  ;;  %vm1089_vm5 = vcmask 1045504  }
 0x563   : > { %v762_v56 = vcombine.low %v759_v54, %v758_v53  ;;  %v752_v16 = vsel %vm614_vm10, %v750_v59, 0.0  ;;  %v1100_v49 = vsel %vm1080_vm15, %v2260_v26, %v1050_v29  ;;  %v1101_v29 = vsel %vm1083_vm2, %v1099_v35, %v1057_v36 }
 0x564   : > { %v773_v61 = vpop.permute.xlu1 %772  ;;  %v952_v10 = vrot.slane %v752_v16, %v2203_v34  ;;  %v956_v39 = vrot.slane %v752_v16, %v2217_v37  ;;  %v1102_v42 = vsel %vm1083_vm2, %v1100_v49, %v1061_v38 }
 0x565   : > { %v769_v5 = vrot.slane %v762_v56, %v2186_v19  ;;  %v775_v8 = vpop.permute.xlu0 %774 }
 0x566   : > { %v777_v15 = vsel %vm776_vm7, %v773_v61, %v775_v8  ;;  %v778_v17 = vsel %vm776_vm7, %v775_v8, %v773_v61  ;;  %v1076_v54 = vsel %vm1075_vm12, %v941_v43, %v952_v10  ;;  %v1077_v58 = vsel %vm1075_vm12, %v945_v47, %v956_v39 }
 0x567   : > { %v781_v21 = vcombine.low %v777_v15, %v778_v17  ;;  %v771_v48 = vsel %vm615_vm8, %v769_v5, 0.0  ;;  %v973_v61 = vrot.slane %v2152_v52, 5  ;;  %v1013_v39 = vrot.slane %v846_v30, %v2203_v34 }
 0x568   : > { %v792_v18 = vpop.permute.xlu1 %791  ;;  %v963_v40 = vrot.slane %v771_v48, %v2203_v34  ;;  %v967_v44 = vrot.slane %v771_v48, %v2217_v37  ;;  %vm1880_vm7 = vmmov 1   ;;  %vm1190_vm12 = vcmp.lt.s32.totalorder %v2170_v60, 3 }
 0x569   : > { %v794_v2 = vpop.permute.xlu0 %793  ;;  %v788_v33 = vrot.slane %v781_v21, %v2186_v19 }
 0x56a   : > { %v796_v4 = vsel %vm795_vm9, %v792_v18, %v794_v2  ;;  %v797_v3 = vsel %vm795_vm9, %v794_v2, %v792_v18  ;;  %v1078_v59 = vsel %vm451_vm4, %v1076_v54, %v963_v40  ;;  %v1079_v63 = vsel %vm451_vm4, %v1077_v58, %v967_v44  ;;  %vm1665_vm9 = vmpackc.low %vm1089_vm5, %vm1880_vm7 }
 0x56b   : > { %v800_v9 = vcombine.low %v796_v4, %v797_v3  ;;  %v790_v14 = vsel %vm616_vm13, %v788_v33, 0.0  ;;  %vm1086_vm4 = vcmask 1044480   ;;  %v1081_v21 = vsel %vm1080_vm15, %v1078_v59, %v972_v55 }
 0x56c   : > { %v811_v41 = vpop.permute.xlu1 %810  ;;  %v980_v0 = vrot.slane %v790_v14, %v2203_v34  ;;  %v984_v5 = vrot.slane %v790_v14, %v2217_v37  ;;  %v1082_v23 = vsel %vm1080_vm15, %v1079_v63, %v973_v61  ;;  %v1017_v40 = vrot.slane %v846_v30, %v2217_v37 }
 0x56d   : > { %v807_v45 = vrot.slane %v800_v9, %v2186_v19  ;;  %v813_v46 = vpop.permute.xlu0 %812  ;;  %vm1229_vm15 = vcmp.lt.s32.totalorder %v2170_v60, 2 }
 0x56e   : > { %v815_v51 = vsel %vm814_vm1, %v811_v41, %v813_v46  ;;  %v816_v53 = vsel %vm814_vm1, %v813_v46, %v811_v41  ;;  %v1084_v31 = vsel %vm1083_vm2, %v1081_v21, %v980_v0  ;;  %v1085_v48 = vsel %vm1083_vm2, %v1082_v23, %v984_v5 }
 0x56f   : > { %v809_v56 = vsel %vm617_vm14, %v807_v45, 0.0  ;;  %v819_v57 = vcombine.low %v815_v51, %v816_v53  ;;  %vm1303_vm2 = vcmp.lt.s32.totalorder %v2170_v60, 127 }
 0x570   : > { %v920_v62 = vpop.permute.xlu1 %919  ;;  %v991_v11 = vrot.slane %v809_v56, %v2203_v34  ;;  %v995_v13 = vrot.slane %v809_v56, %v2217_v37 }
 0x571   : > { %v826_v50 = vrot.slane %v819_v57, %v2186_v19  ;;  %v922_v8 = vpop.permute.xlu0 %921 }
 0x572   : > { %v923_v15 = vsel %vm814_vm1, %v920_v62, %v922_v8  ;;  %v924_v52 = vsel %vm814_vm1, %v922_v8, %v920_v62  ;;  %v1087_v33 = vsel %vm1086_vm4, %v1084_v31, %v991_v11  ;;  %v1088_v4 = vsel %vm1086_vm4, %v1085_v48, %v995_v13 }
 0x573   : > { %v828_v17 = vsel %vm618_vm3, %v826_v50, 0.0  ;;  %v927_v20 = vcombine.low %v923_v15, %v924_v52  ;;  %vm1266_vm1 = vcmp.lt.s32.totalorder %v2170_v60, 1  ;;  %v1209_v48 = vsub.s32 1, %v2178_v12 }
 0x574   : > { %v1002_v16 = vrot.slane %v828_v17, %v2203_v34  ;;  %v1006_v18 = vrot.slane %v828_v17, %v2217_v37 }
 0x575   : > { %v934_v2 = vrot.slane %v927_v20, %v2186_v19 }
 0x576   : > { %v1090_v10 = vsel %vm1089_vm5, %v1087_v33, %v1002_v16  ;;  %v1091_v9 = vsel %vm1089_vm5, %v1088_v4, %v1006_v18 }
 0x577   : > { %v936_v3 = vsel %vm618_vm3, %v934_v2, 0.0  ;;  %v1093_v43 = vsel %vm1092_vm6, %v1090_v10, %v1013_v39  ;;  %v1094_v44 = vsel %vm1092_vm6, %v1091_v9, %v1017_v40  ;;  %v2375_v2 = vsub.s32 3, %v2178_v12 }
 0x578   : > { %v1068_v41 = vrot.slane %v936_v3, %v2203_v34  ;;  %v1072_v26 = vrot.slane %v936_v3, %v2217_v37  ;;  %v248_v34 = vld [vmem:[%s2470_s4] sm:$0x7f] }
 0x57a   : > { %v1103_v45 = vsel %vm1086_vm4, %v1101_v29, %v1068_v41  ;;  %v1104_v46 = vsel %vm1086_vm4, %v1102_v42, %v1072_v26  ;;  %vm1340_vm4 = vcmp.lt.s32.totalorder %v2170_v60, 126 }
 0x57b   : > { %v1664_v47 = vpack.c.bf16 %v1104_v46, %v1094_v44  ;;  %v1667_v14 = vpack.c.bf16 %v1103_v45, %v1093_v43 }
 0x57d   : > { %1666 = vmatprep.subr.msk.bf16.mxu1 %vm1665_vm9, %v1664_v47 }
 0x57e   : > { %1669 = vmatpush1.bf16.msk.msra.mxu1 %vm1665_vm9, %v1667_v14 }
 0x581   : > { %1551 = vmatmul.mubr.msk.f32.vlgmr.msra.gmra.mrb[8].mxu1 %vm1105_vm11, %v248_v34 }
 0x654   : > { %v2349_v37 = vpop.f32.mrb[8].mxu1 }
 0x655   : > { %1186 = vrot.lane.b32.xlu1 %v2349_v37, %s1881_s9  ;;  %v2352_v35 = vpop.f32.mrb[9].mxu1  ;;  %v1221_v36 = vrot.slane %v2349_v37, 1  ;;  %v1258_v51 = vrot.slane %v2349_v37, 2  ;;  %v1295_v54 = vrot.slane %v2349_v37, 4  ;;  %v1332_v56 = vrot.slane %v2349_v37, 5 }
 0x656   : > { %1188 = vrot.lane.b32.xlu0 %v2352_v35, %s1881_s9  ;;  %v1222_v38 = vrot.slane %v2352_v35, 1  ;;  %v1259_v53 = vrot.slane %v2352_v35, 2  ;;  %v1296_v55 = vrot.slane %v2352_v35, 4  ;;  %v1333_v57 = vrot.slane %v2352_v35, 5  ;;  %s1801_s9 = scalar_lea.vmem %s1800_s7, 2048 }
 0x657   : > { %v1369_v58 = vrot.slane %v2349_v37, 6  ;;  %v1370_v59 = vrot.slane %v2352_v35, 6  ;;  %p1803_p10 = scmp.lt.s32.totalorder %s1801_s9, %s1795_s16 }
 0x659   : > { %1225 = vrot.lane.b32.xlu1 %v1221_v36, %s1882_s10  ;;  %p1804_p0 = por %p1803_p10, %p1802_p8 }
 0x65a   : > { %1227 = vrot.lane.b32.xlu0 %v1222_v38, %s1882_s10 }
 0x65b   : > { %p1805_p2 = pnand %p1804_p0, %p1798_p13 }
 0x65d   : > { %1262 = vrot.lane.b32.xlu1 %v1258_v51, %s1883_s11 }
 0x65e   : > { %1264 = vrot.lane.b32.xlu0 %v1259_v53, %s1883_s11 }
 0x661   : > { %1299 = vrot.lane.b32.xlu1 %v1295_v54, %s1870_s13 }
 0x662   : > { %1301 = vrot.lane.b32.xlu0 %v1296_v55, %s1870_s13  ;;  %s1560_s13 = sshll.u32 %s1939_s22, 10 }
 0x663   : > { %s2415_s22 = scalar_lea.hbm %s2471_s5, %s1560_s13 }
 0x665   : > { %1336 = vrot.lane.b32.xlu1 %v1332_v56, %s1884_s17 }
 0x666   : > { %1338 = vrot.lane.b32.xlu0 %v1333_v57, %s1884_s17 }
 0x669   : > { %1373 = vrot.lane.b32.xlu1 %v1369_v58, %s1885_s28 }
 0x66a   : > { %1375 = vrot.lane.b32.xlu0 %v1370_v59, %s1885_s28 }
 0x6c7   : > { %v1187_v61 = vpop.permute.xlu1 %1186 }
 0x6c8   : > { %v1189_v62 = vpop.permute.xlu0 %1188 }
 0x6c9   : > { %v1191_v63 = vsel %vm1190_vm12, %v1187_v61, %v1189_v62  ;;  %v1192_v0 = vsel %vm1190_vm12, %v1189_v62, %v1187_v61 }
 0x6ca   : > { %v1195_v5 = vcombine.low %v1192_v0, %v1191_v63 }
 0x6cb   : > { %v1226_v50 = vpop.permute.xlu1 %1225 }
 0x6cc   : > { %v1228_v8 = vpop.permute.xlu0 %1227  ;;  %v1202_v11 = vrot.slane %v1195_v5, %v2186_v19 }
 0x6cd   : > { %v1230_v13 = vsel %vm1229_vm15, %v1226_v50, %v1228_v8  ;;  %v1231_v15 = vsel %vm1229_vm15, %v1228_v8, %v1226_v50 }
 0x6ce   : > { %v1234_v52 = vcombine.low %v1231_v15, %v1230_v13  ;;  %v1203_v23 = vrot.slane %v1202_v11, 7 }
 0x6cf   : > { %v1263_v17 = vpop.permute.xlu1 %1262 }
 0x6d0   : > { %v1241_v20 = vrot.slane %v1234_v52, %v2186_v19  ;;  %v1265_v21 = vpop.permute.xlu0 %1264  ;;  %v1205_v3 = vsel %vm613_vm0, %v1203_v23, 0.0  ;;  %vm1377_vm0 = vcmp.lt.s32.totalorder %v2170_v60, 125 }
 0x6d1   : > { %v1267_v16 = vsel %vm1266_vm1, %v1263_v17, %v1265_v21  ;;  %v1268_v18 = vsel %vm1266_vm1, %v1265_v21, %v1263_v17  ;;  %v1210_v26 = vrot.slane %v1205_v3, %v1209_v48  ;;  %v1214_v29 = vrot.slane %v1205_v3, %v2375_v2 }
 0x6d2   : > { %v1271_v30 = vcombine.low %v1268_v18, %v1267_v16  ;;  %v1242_v49 = vrot.slane %v1241_v20, 7 }
 0x6d3   : > { %v1300_v31 = vpop.permute.xlu1 %1299  ;;  %v1217_v51 = vadd.f32 %v1210_v26, %v2349_v37  ;;  %v1218_v53 = vadd.f32 %v1214_v29, %v2352_v35 }
 0x6d4   : > { %v1278_v33 = vrot.slane %v1271_v30, %v2186_v19  ;;  %v1302_v4 = vpop.permute.xlu0 %1301  ;;  %v1244_v12 = vsel %vm614_vm10, %v1242_v49, 0.0 }
 0x6d5   : > { %v1304_v10 = vsel %vm1303_vm2, %v1300_v31, %v1302_v4  ;;  %v1305_v9 = vsel %vm1303_vm2, %v1302_v4, %v1300_v31  ;;  %v1249_v34 = vrot.slane %v1244_v12, %v1209_v48  ;;  %v1253_v36 = vrot.slane %v1244_v12, %v2375_v2 }
 0x6d6   : > { %v1279_v39 = vrot.slane %v1278_v33, 7  ;;  %v1308_v40 = vcombine.low %v1304_v10, %v1305_v9 }
 0x6d7   : > { %v1337_v41 = vpop.permute.xlu1 %1336  ;;  %v1256_v63 = vadd.f32 %v1249_v34, %v1217_v51  ;;  %v1257_v0 = vadd.f32 %v1253_v36, %v1218_v53 }
 0x6d8   : > { %v1315_v42 = vrot.slane %v1308_v40, %v2186_v19  ;;  %v1339_v43 = vpop.permute.xlu0 %1338  ;;  %v1281_v46 = vsel %vm615_vm8, %v1279_v39, 0.0 }
 0x6d9   : > { %v1341_v44 = vsel %vm1340_vm4, %v1337_v41, %v1339_v43  ;;  %v1342_v45 = vsel %vm1340_vm4, %v1339_v43, %v1337_v41  ;;  %v1286_v57 = vrot.slane %v1281_v46, %v1209_v48  ;;  %v1290_v58 = vrot.slane %v1281_v46, %v2375_v2 }
 0x6da   : > { %v1316_v47 = vrot.slane %v1315_v42, 7  ;;  %v1345_v14 = vcombine.low %v1341_v44, %v1342_v45 }
 0x6db   : > { %v1374_v38 = vpop.permute.xlu1 %1373  ;;  %v1293_v8 = vadd.f32 %v1286_v57, %v1256_v63  ;;  %v1294_v11 = vadd.f32 %v1290_v58, %v1257_v0 }
 0x6dc   : > { %v1318_v54 = vsel %vm616_vm13, %v1316_v47, 0.0  ;;  %v1352_v55 = vrot.slane %v1345_v14, %v2186_v19  ;;  %v1376_v56 = vpop.permute.xlu0 %1375 }
 0x6dd   : > { %v1378_v59 = vsel %vm1377_vm0, %v1374_v38, %v1376_v56  ;;  %v1379_v61 = vsel %vm1377_vm0, %v1376_v56, %v1374_v38  ;;  %v1323_v5 = vrot.slane %v1318_v54, %v1209_v48  ;;  %v1327_v37 = vrot.slane %v1318_v54, %v2375_v2 }
 0x6de   : > { %v1353_v60 = vrot.slane %v1352_v55, 7  ;;  %v1382_v62 = vcombine.low %v1378_v59, %v1379_v61 }
 0x6df   : > { %v1330_v17 = vadd.f32 %v1323_v5, %v1293_v8  ;;  %v1331_v20 = vadd.f32 %v1327_v37, %v1294_v11 }
 0x6e0   : > { %v1355_v35 = vsel %vm617_vm14, %v1353_v60, 0.0  ;;  %v1389_v50 = vrot.slane %v1382_v62, %v2186_v19 }
 0x6e1   : > { %v1360_v13 = vrot.slane %v1355_v35, %v1209_v48  ;;  %v1364_v15 = vrot.slane %v1355_v35, %v2375_v2 }
 0x6e2   : > { %v1390_v52 = vrot.slane %v1389_v50, 7 }
 0x6e3   : > { %v1367_v23 = vadd.f32 %v1360_v13, %v1330_v17  ;;  %v1368_v16 = vadd.f32 %v1364_v15, %v1331_v20 }
 0x6e4   : > { %v1392_v21 = vsel %vm618_vm3, %v1390_v52, 0.0 }
 0x6e5   : > { %v1397_v18 = vrot.slane %v1392_v21, %v1209_v48  ;;  %v1401_v30 = vrot.slane %v1392_v21, %v2375_v2 }
 0x6e7   : > { %v1404_v31 = vadd.f32 %v1397_v18, %v1367_v23  ;;  %v1405_v19 = vadd.f32 %v1401_v30, %v1368_v16 }
 0x6e9   : > { %v1552_v49 = vmul.f32 -1.442695, %v1404_v31  ;;  %v1553_v33 = vmul.f32 -1.442695, %v1405_v19 }
 0x6eb   : > { %1757 = vpow2.f32 %v1552_v49 }
 0x6ec   : > { %1759 = vpow2.f32 %v1553_v33 }
 0x6f5   : > { %v1758_v4 = vpop.eup %1757 }
 0x6f6   : > { %v1760_v3 = vpop.eup %1759  ;;  %v1412_v10 = vadd.f32 1.0, %v1758_v4 }
 0x6f7   : > { %v1413_v9 = vadd.f32 1.0, %v1760_v3 }
 0x6f8   : > { %1761 = vrcp.f32 %v1412_v10 }
 0x6f9   : > { %1763 = vrcp.f32 %v1413_v9 }
 0x702   : > { %v1762_v22 = vpop.eup %1761 }
 0x703   : > { %v1764_v39 = vpop.eup %1763  ;;  %v1421_v48 = vrot.slane %v1762_v22, %v2375_v2 }
 0x704   : > { %v1425_v40 = vrot.slane %v1764_v39, %v2375_v2 }
 0x705   : > { %v1426_v41 = vmul.f32 %v1421_v48, %v2099_v27  ;;  %v1428_v26 = vmul.f32 %v1421_v48, %v2093_v24  ;;  %v1430_v29 = vmul.f32 %v1421_v48, %v2109_v7  ;;  %v1432_v12 = vmul.f32 %v1421_v48, %v2115_v32 }
 0x706   : > { %v1427_v42 = vmul.f32 %v1425_v40, %v2102_v28  ;;  %v1429_v43 = vmul.f32 %v1425_v40, %v2096_v25  ;;  %v1431_v2 = vmul.f32 %v1425_v40, %v2112_v6  ;;  %v1433_v27 = vmul.f32 %v1425_v40, %v2118_v1 }
 0x707   : > { %1434 = vst [vmem:[%s242_s29] sm:$0xff] %v1426_v41  ;;  %1436 = vst [vmem:[%s242_s29 + $0x10] sm:$0xff] %v1428_v26 }
 0x708   : > { %1438 = vst [vmem:[%s242_s29 + $0x20] sm:$0xff] %v1430_v29  ;;  %1440 = vst [vmem:[%s242_s29 + $0x30] sm:$0xff] %v1432_v12 }
 0x709   : > { %1435 = vst [vmem:[%s242_s29 + $0x8] sm:$0xff] %v1427_v42  ;;  %1437 = vst [vmem:[%s242_s29 + $0x18] sm:$0xff] %v1429_v43 }
 0x70a   : > { %1439 = vst [vmem:[%s242_s29 + $0x28] sm:$0xff] %v1431_v2  ;;  %1441 = vst [vmem:[%s242_s29 + $0x38] sm:$0xff] %v1433_v27 }
 0x70b   : > { %1808 = shalt.err (!%p1805_p2)
}
 0x70c   : > { %s1809_s10 = scalar_lea.hbm %s2415_s22, 1024  ;;  %s1813_s28 = scalar_lea.hbm %s2471_s5, 2048 }
 0x70d   : > { %p1810_p4 = scmp.ne.s32.totalorder %s2415_s22, %s1809_s10  ;;  %p1814_p9 = scmp.lt.u32.totalorder %s2415_s22, %s2471_s5 }
 0x70e   : > { %p1815_p1 = scmp.lt.u32.totalorder %s1813_s28, %s1809_s10  ;;  %p1817_p6 = scmp.lt.u32.totalorder %s1809_s10, %s2415_s22 }
 0x70f   : > { %p1811_p5 = pnand %p1810_p4, %p2478_p11 }
 0x710   : > { %p1816_p3 = por %p1815_p1, %p1814_p9 }
 0x711   : > { %p1812_p7 = pneg %p1811_p5 }
 0x712   : > { %p1818_p12 = por %p1817_p6, %p1816_p3 }
 0x714   : > { %p1819_p13 = pnand %p1818_p12, %p1812_p7 }
 0x716   : > { %1822 = shalt.err (!%p1819_p13)
}
 0x717   : > { %s1887_s14 = smov 256  }
 0x718   : > { %1672 = dma.vmem_to_hbm [thread:$0]  (%p2478_p11), %s2421_s12, 1024, %s2415_s22, %s1443_s25, %s1887_s14, %s1887_s14, %s1874_s26  }
 0x719 PF: > { %s1471_s15 = sand.u32 1, %s1849_s18   ;;  %p2479_p8 = scmp.ne.s32.totalorder %s2476_s6, 0 }
 0x71a   : > { %p2480_p10 = scmp.ge.s32.totalorder %s1861_s21, 2  ;;  %s1472_s16 = scalar_lea.sflag [#allocation4], %s1471_s15 }
 0x71c   : > { %p1679_p0 = pnand %p2480_p10, %p2479_p8 }
 0x71e   : > { %1844 = dma.done.wait (!%p1679_p0), %s1472_s16, 1024  }
 0x71f   : > { %1846 = vsyncadd (!%p1679_p0), %s1472_s16, 4294966272  ;;  %p18_p2 = scmp.ge.s32.totalorder %s1943_s24, 4   ;;  %s2481_s18 = smov %s1853_s19 }
 0x720   : > { %s2482_s19 = smov %s1857_s20  ;;  %s2483_s20 = smov %s1955_s27 }
 0x721   : > { %s2484_s21 = smov %s1943_s24  ;;  %20 = sbr.rel (!%p18_p2) target bundleno = 5 (0x5), region = 85 }
 0x728   :  { %1477 = vsyncpa [#allocation3], 1 }
 0x729   :  { %1479 = vsyncpa [#allocation3 + $0x1], 1 }
 0x72a   :  { %1480 = vsyncpa [#allocation4], 1 }
 0x72b   :  { %1482 = vsyncpa [#allocation4 + $0x1], 1 }

</bundles_post_ra>
